<compile_context>
chip_gen: v6e
topology: v6e:2x2x1
jax: 0.10.0
libtpu: 0.0.40
codegen_flags: <defaults>
</compile_context>

<pallas_src>
import jax
import jax.numpy as jnp
from jax import lax
from jax.experimental import pallas as pl
from jax.experimental.pallas import tpu as pltpu


def _cdiv(a, b):
    return -(-a // b)


def _round_up(a, b):
    return _cdiv(a, b) * b


def _conv1x1_batched_kernel(x_ref, w_ref, b_ref, o_ref):
    """Mode A: several batches per grid step, full spatial extent per block.

    x_ref: (Bt, C_in, M)  w_ref: (C_out, C_in)  b_ref: (C_out, 1)
    o_ref: (Bt, C_out, M)  -- M is the full H*W, lane-dense stores.

    A short loop of plain 2-D MXU matmuls avoids the (m, o)->(o, m) relayout a
    batched einsum would introduce; the compute hides under DMA either way.
    """
    w = w_ref[...]
    b = b_ref[...]
    bt = x_ref.shape[0]

    def body(i, carry):
        acc = jnp.dot(w, x_ref[i], preferred_element_type=jnp.float32,
                      precision=lax.Precision.HIGHEST)
        o_ref[i] = (acc + b).astype(o_ref.dtype)
        return carry

    lax.fori_loop(0, bt, body, 0, unroll=bool(bt <= 8))


def _conv1x1_mtiled_kernel(x_ref, w_ref, b_ref, o_ref):
    """Mode B: one batch per step, large 128-aligned M tiles.

    x_ref: (C_in, TM)  w_ref: (C_out, C_in)  b_ref: (C_out, 1)  o_ref: (C_out, TM)
    """
    acc = jnp.dot(w_ref[...], x_ref[...], preferred_element_type=jnp.float32,
                  precision=lax.Precision.HIGHEST)
    o_ref[...] = (acc + b_ref[...]).astype(o_ref.dtype)


def _plan(B, C_in, C_out, M, itemsize):
    """Per-generation VMEM budget and step sizing for an HBM-bound kernel."""
    # Physical VMEM per TensorCore: 128 MiB on v5e/v6e, 64 MiB on v7x.
    try:
        phys = int(pltpu.get_tpu_info().vmem_capacity_bytes)
    except Exception:
        phys = 64 << 20                     # assume the smallest (v7x) if unknown
    vmem_limit = int(min(phys * 3 // 4, 96 << 20))  # above 16/32 MiB scoped default
    stream_budget = int(vmem_limit * 0.6)           # double-buffered x/out blocks

    n_buf = 2            # default double buffering on streamed operands.
                         # (pl.Buffered(3) on x/out is a further few-% knob once
                         #  per-step bytes are large; buffer count scales VMEM,
                         #  so the budget below assumes 2 buffers.)
    target_step = 2 << 20                 # >= ~2 MiB/step hides ~0.35 us overhead
    row_pair = (C_in + C_out) * itemsize  # in+out bytes for one spatial column
    slab = M * row_pair                   # in+out bytes for one whole batch

    if n_buf * slab <= stream_budget:
        # Mode A: full-M blocks; block enough batches per step to hit the DMA
        # granularity target. Tiny problems become a single-step launch.
        bt_cap = max(1, min(B, stream_budget // (n_buf * slab)))
        bt = min(bt_cap, max(1, _cdiv(target_step, max(slab, 1))), B)
        steps = _cdiv(B, bt)
        # Megacore (v7x): keep >= 2 grid steps when the problem is big enough
        # that giving work to both TensorCores matters.
        if steps == 1 and B >= 2 and B * slab > 4 * target_step:
            steps = 2
        bt = _cdiv(B, steps)              # balance the batch blocks
        return {"mode": "A", "bt": bt, "steps": _cdiv(B, bt),
                "vmem_limit": vmem_limit}

    # Mode B: a single batch's full-M slab does not fit double-buffered;
    # tile M with large, balanced, 128-aligned tiles (no near-empty tail).
    tm_cap = max(128, (stream_budget // (n_buf * row_pair)) // 128 * 128)
    n_tiles = _cdiv(M, tm_cap)
    tm = min(M, _round_up(_cdiv(M, n_tiles), 128))
    return {"mode": "B", "tm": tm, "n_tiles": _cdiv(M, tm),
            "vmem_limit": vmem_limit}


def linear_pallas(x_nchw, weight, bias):
    """Forward of PyTorch `linear` (nn.Conv2d(c_in, c_out, kernel_size=1, bias=True)).

    x_nchw: (B, C_in, H, W) float32
    weight: (C_out, C_in) or (C_out, C_in, 1, 1) float32
    bias:   (C_out,) float32
    returns (B, C_out, H, W) float32
    """
    B, C_in, H, W = x_nchw.shape
    C_out = weight.shape[0]
    w2d = weight.reshape(C_out, C_in)     # squeeze the 1x1 taps (free reshape)
    b2d = bias.reshape(C_out, 1)
    M = H * W
    x3d = x_nchw.reshape(B, C_in, M)      # contiguous reshape, no copy

    plan = _plan(B, C_in, C_out, M, x3d.dtype.itemsize)

    cost = pl.CostEstimate(
        flops=2 * B * M * C_in * C_out,
        transcendentals=0,
        bytes_accessed=x3d.dtype.itemsize
        * (B * M * (C_in + C_out) + C_in * C_out + C_out),
    )

    if plan["mode"] == "A":
        bt = plan["bt"]
        grid = (plan["steps"],)
        kernel = _conv1x1_batched_kernel
        in_specs = [
            pl.BlockSpec((bt, C_in, M), lambda i: (i, 0, 0)),
            pl.BlockSpec((C_out, C_in), lambda i: (0, 0)),   # grid-invariant
            pl.BlockSpec((C_out, 1), lambda i: (0, 0)),      # grid-invariant
        ]
        out_specs = pl.BlockSpec((bt, C_out, M), lambda i: (i, 0, 0))
        dims = ("parallel",)
    else:
        tm, n_tiles = plan["tm"], plan["n_tiles"]
        kernel = _conv1x1_mtiled_kernel
        # Megacore (v7x): the larger-iteration axis leads so neither TC idles.
        if n_tiles >= B:
            grid = (n_tiles, B)
            xo_map = lambda m, b: (b, 0, m)
            wb_map = lambda m, b: (0, 0)
        else:
            grid = (B, n_tiles)
            xo_map = lambda b, m: (b, 0, m)
            wb_map = lambda b, m: (0, 0)
        in_specs = [
            pl.BlockSpec((None, C_in, tm), xo_map),
            pl.BlockSpec((C_out, C_in), wb_map),             # grid-invariant
            pl.BlockSpec((C_out, 1), wb_map),                # grid-invariant
        ]
        out_specs = pl.BlockSpec((None, C_out, tm), xo_map)
        dims = ("parallel", "parallel")

    out = pl.pallas_call(
        kernel,
        out_shape=jax.ShapeDtypeStruct((B, C_out, M), x_nchw.dtype),
        grid_spec=pltpu.PrefetchScalarGridSpec(
            num_scalar_prefetch=0,
            grid=grid,
            in_specs=in_specs,
            out_specs=out_specs,
        ),
        compiler_params=pltpu.CompilerParams(
            dimension_semantics=dims,
            vmem_limit_bytes=plan["vmem_limit"],
        ),
        cost_estimate=cost,
    )(x3d, w2d, b2d)

    # Free reshape back to NCHW.
    return out.reshape(B, C_out, H, W)


if __name__ == "__main__":
    # Small shapes consistent with the module's forward.
    B, C_in, C_out, H, W = 2, 4, 8, 16, 16

    key = jax.random.PRNGKey(0)
    kx, kw, kb = jax.random.split(key, 3)

    x = jax.random.normal(kx, (B, C_in, H, W), dtype=jnp.float32)
    # Conv2d(c_in, c_out, kernel_size=(1,1), bias=True) parameter shapes.
    weight = jax.random.normal(kw, (C_out, C_in, 1, 1), dtype=jnp.float32) * 0.1
    bias = jax.random.normal(kb, (C_out,), dtype=jnp.float32) * 0.1

    y = jax.block_until_ready(linear_pallas(x, weight, bias))

    # Reference check against plain-JAX 1x1 conv.
    y_ref = (jnp.einsum("bchw,oc->bohw", x, weight[:, :, 0, 0])
             + bias[None, :, None, None])
    assert y.shape == (B, C_out, H, W)
    assert jnp.allclose(y, y_ref, atol=1e-5, rtol=1e-5)

    print("KERNEL_OK")
</pallas_src>

<mosaic_0001>
module attributes {stable_mosaic.version = 11 : i64} {
  func.func @_conv1x1_batched_kernel(%arg0: i32, %arg1: memref<2x4x256xf32, #tpu.memory_space<vmem>>, %arg2: memref<8x4xf32, #tpu.memory_space<vmem>>, %arg3: memref<8x1xf32, #tpu.memory_space<vmem>>, %arg4: memref<2x8x256xf32, #tpu.memory_space<vmem>>) attributes {dimension_semantics = [#tpu.dimension_semantics<parallel>], iteration_bounds = array<i64: 1>, scalar_prefetch = 0 : i64, scratch_operands = 0 : i64, tpu.core_type = #tpu.core_type<tc>, window_params = [{transform_indices = @transform_0, window_bounds = array<i64: 2, 4, 256>}, {pipeline_mode = #tpu.pipeline_mode<synchronous>, transform_indices = @transform_1, window_bounds = array<i64: 8, 4>}, {pipeline_mode = #tpu.pipeline_mode<synchronous>, transform_indices = @transform_2, window_bounds = array<i64: 8, 1>}, {transform_indices = @transform_3, window_bounds = array<i64: 2, 8, 256>}]} {
    %c0 = arith.constant 0 : index
    %c0_0 = arith.constant 0 : index
    %0 = vector.load %arg2[%c0, %c0_0] : memref<8x4xf32, #tpu.memory_space<vmem>>, vector<8x4xf32>
    %c0_1 = arith.constant 0 : index
    %c0_2 = arith.constant 0 : index
    %1 = vector.load %arg3[%c0_1, %c0_2] : memref<8x1xf32, #tpu.memory_space<vmem>>, vector<8x1xf32>
    %c0_i32 = arith.constant 0 : i32
    %2 = arith.index_cast %c0_i32 : i32 to index
    %c0_3 = arith.constant 0 : index
    %c0_4 = arith.constant 0 : index
    %3 = vector.load %arg1[%2, %c0_3, %c0_4] : memref<2x4x256xf32, #tpu.memory_space<vmem>>, vector<1x4x256xf32>
    %4 = vector.shape_cast %3 : vector<1x4x256xf32> to vector<4x256xf32>
    %cst = arith.constant dense<0.000000e+00> : vector<8x256xf32>
    %5 = tpu.matmul %0, %4, %cst {dimension_numbers = #tpu.dot_dimension_numbers<[1], [0], [0], [1], [0, 0, 1, 1], [], []>, precision = #tpu.contract_precision<fp32>} : vector<8x4xf32>, vector<4x256xf32>, vector<8x256xf32> -> vector<8x256xf32>
    %6 = vector.broadcast %1 : vector<8x1xf32> to vector<8x256xf32>
    %7 = arith.addf %5, %6 : vector<8x256xf32>
    %8 = arith.index_cast %c0_i32 : i32 to index
    %c0_5 = arith.constant 0 : index
    %c0_6 = arith.constant 0 : index
    %9 = vector.load %arg4[%8, %c0_5, %c0_6] : memref<2x8x256xf32, #tpu.memory_space<vmem>>, vector<1x8x256xf32>
    %10 = vector.shape_cast %9 : vector<1x8x256xf32> to vector<8x256xf32>
    %11 = vector.shape_cast %7 : vector<8x256xf32> to vector<1x8x256xf32>
    tpu.vector_store %arg4[%8, %c0_5, %c0_6], %11 {strides = array<i32>} : memref<2x8x256xf32, #tpu.memory_space<vmem>>, vector<1x8x256xf32>,
    %c1_i32 = arith.constant 1 : i32
    %12 = arith.index_cast %c1_i32 : i32 to index
    %c0_7 = arith.constant 0 : index
    %c0_8 = arith.constant 0 : index
    %13 = vector.load %arg1[%12, %c0_7, %c0_8] : memref<2x4x256xf32, #tpu.memory_space<vmem>>, vector<1x4x256xf32>
    %14 = vector.shape_cast %13 : vector<1x4x256xf32> to vector<4x256xf32>
    %cst_9 = arith.constant dense<0.000000e+00> : vector<8x256xf32>
    %15 = tpu.matmul %0, %14, %cst_9 {dimension_numbers = #tpu.dot_dimension_numbers<[1], [0], [0], [1], [0, 0, 1, 1], [], []>, precision = #tpu.contract_precision<fp32>} : vector<8x4xf32>, vector<4x256xf32>, vector<8x256xf32> -> vector<8x256xf32>
    %16 = vector.broadcast %1 : vector<8x1xf32> to vector<8x256xf32>
    %17 = arith.addf %15, %16 : vector<8x256xf32>
    %18 = arith.index_cast %c1_i32 : i32 to index
    %c0_10 = arith.constant 0 : index
    %c0_11 = arith.constant 0 : index
    %19 = vector.load %arg4[%18, %c0_10, %c0_11] : memref<2x8x256xf32, #tpu.memory_space<vmem>>, vector<1x8x256xf32>
    %20 = vector.shape_cast %19 : vector<1x8x256xf32> to vector<8x256xf32>
    %21 = vector.shape_cast %17 : vector<8x256xf32> to vector<1x8x256xf32>
    tpu.vector_store %arg4[%18, %c0_10, %c0_11], %21 {strides = array<i32>} : memref<2x8x256xf32, #tpu.memory_space<vmem>>, vector<1x8x256xf32>,
    %c2_i32 = arith.constant 2 : i32
    return
  }
  func.func @transform_0(%arg0: i32) -> (i32, i32, i32) {
    %c0_i32 = arith.constant 0 : i32
    %c0_i32_0 = arith.constant 0 : i32
    %c0_i32_1 = arith.constant 0 : i32
    return %arg0, %c0_i32, %c0_i32_0 : i32, i32, i32
  }
  func.func @transform_1(%arg0: i32) -> (i32, i32) {
    %c0_i32 = arith.constant 0 : i32
    %c0_i32_0 = arith.constant 0 : i32
    %c0_i32_1 = arith.constant 0 : i32
    return %c0_i32, %c0_i32_0 : i32, i32
  }
  func.func @transform_2(%arg0: i32) -> (i32, i32) {
    %c0_i32 = arith.constant 0 : i32
    %c0_i32_0 = arith.constant 0 : i32
    %c0_i32_1 = arith.constant 0 : i32
    return %c0_i32, %c0_i32_0 : i32, i32
  }
  func.func @transform_3(%arg0: i32) -> (i32, i32, i32) {
    %c0_i32 = arith.constant 0 : i32
    %c0_i32_0 = arith.constant 0 : i32
    %c0_i32_1 = arith.constant 0 : i32
    return %arg0, %c0_i32, %c0_i32_0 : i32, i32, i32
  }
}

</mosaic_0001>

<bundles_post_ra>
// kernel: tpu_custom_call.1
= control target key start
LH: loop header
LB: loop body
LE: loop exit
PB: predicated region body
PF: predicated region fallthrough
CT: control target
= control target key end

     0   :  { %vm29_vm0 = vcmask 1043456   ;;  %vm25_vm1 = vcmask 31744   ;;  %v1024_v5 = vmov 0.0   ;;  %s1089_s0 = inlined_call_operand.vmem [shape: f32[2,4,256], index: 0, kind: input, shape index: {}]   ;;  %s1090_s1 = inlined_call_operand.vmem [shape: f32[8,4], index: 1, kind: input, shape index: {}]   ;;  %s1091_s2 = inlined_call_operand.vmem [shape: f32[8,1], index: 2, kind: input, shape index: {}]   ;;  %s1092_s3 = inlined_call_operand.hbm [shape: f32[2,8,256], index: 3, kind: output, shape index: {}]  }
   0x1   :  { %v17_v0 = vld [vmem:[%s1089_s0] sm:$0xff]  ;;  %v993_v2 = vld [vmem:[%s1089_s0 + $0x8] sm:$0xff]  ;;  %100 = vmatprep.mubr.f32.mxu0 %v1024_v5  ;;  %186 = vmatprep.mubr.f32.mxu1 %v1024_v5 }
   0x2   :  { %v15_v1 = vld [vmem:[%s1090_s1] sm:$0xff]  ;;  %v24_v3 = vcombine.high %v17_v0, %v17_v0  ;;  %v30_v4 = vsel %vm29_vm0, %v17_v0, 0  ;;  %v504_v7 = vcombine.high %v993_v2, %v993_v2 }
   0x3   :  { %v27_v6 = vsel %vm25_vm1, %v15_v1, 0  ;;  %v16_v8 = vld [vmem:[%s1091_s2] sm:$0xff] }
   0x4   :  { %8 = vsyncpa [#allocation3], 0  ;;  %v66_v9 = vand.u32 4294901760, %v30_v4  ;;  %v1064_v10 = vand.u32 4294901760, %v27_v6  ;;  %v505_v11 = vsel %vm29_vm0, %v993_v2, 0  ;;  %v32_v12 = vsel %vm29_vm0, %v24_v3, 0 }
   0x5   :  { %v507_v13 = vsel %vm29_vm0, %v504_v7, 0  ;;  %v1025_v14 = vmov 0   ;;  %v64_v15 = vand.u32 4294901760, %v32_v12  ;;  %v541_v19 = vand.u32 4294901760, %v505_v11  ;;  %s1026_s0 = smov [#allocation2]  }
   0x6   :  { %999 = vset.pattern.permute.xlu0 %v1025_v14  ;;  %v102_v16 = vsub.f32 %v27_v6, %v1064_v10  ;;  %v149_v17 = vsub.f32 %v30_v4, %v66_v9  ;;  %v539_v18 = vand.u32 4294901760, %v507_v13  ;;  %s982_s1 = sshll.u32 %s1026_s0, 4  ;;  %s983_s1 = int_to_ptr.vmem [resolvable:$true] %s982_s1 }
   0x7   :  { %20 = vperm.xlu0 %999, %v16_v8   ;;  %65 = vmatprep.subr.mxu0 %v64_v15  ;;  %v143_v21 = vsub.f32 %v32_v12, %v64_v15  ;;  %v624_v27 = vsub.f32 %v505_v11, %v541_v19  ;;  %s1002_s2 = scalar_lea.vmem %s983_s1, 512  ;;  %p1007_p1 = scmp.lt.s32.totalorder %s983_s1, %s983_s1 }
   0x8   :  { %v103_v20 = vand.u32 4294901760, %v102_v16  ;;  %v150_v22 = vand.u32 4294901760, %v149_v17  ;;  %67 = vmatpush1.msra.mxu0 %v66_v9  ;;  %v618_v23 = vsub.f32 %v507_v13, %v539_v18  ;;  %p1003_p0 = scmp.ne.s32.totalorder %s983_s1, %s1002_s2  ;;  %p1008_p2 = scmp.lt.s32.totalorder %s1002_s2, %s1002_s2 }
   0x9   :  { %v144_v25 = vand.u32 4294901760, %v143_v21  ;;  %226 = vmatprep.subr.mxu0 %v143_v21  ;;  %v625_v33 = vand.u32 4294901760, %v624_v27 }
   0xa   :  { %v104_v24 = vsub.f32 %v102_v16, %v103_v20  ;;  %v151_v26 = vsub.f32 %v149_v17, %v150_v22  ;;  %v619_v31 = vand.u32 4294901760, %v618_v23  ;;  %p1009_p3 = por %p1008_p2, %p1007_p1 }
   0xb   :  { %v145_v29 = vsub.f32 %v143_v21, %v144_v25  ;;  %v626_v35 = vsub.f32 %v624_v27, %v625_v33 }
   0xc   :  { %v105_v28 = vand.u32 4294901760, %v104_v24  ;;  %v152_v30 = vand.u32 4294901760, %v151_v26  ;;  %v620_v34 = vsub.f32 %v618_v23, %v619_v31  ;;  %p1010_p4 = pnand %p1009_p3, %p1003_p0 }
   0xd   :  { %v146_v32 = vand.u32 4294901760, %v145_v29  ;;  %v627_v37 = vand.u32 4294901760, %v626_v35 }
   0xe   :  { %106 = vmatmul.mubr.f32.vlgmr.msra.gmra.mxu0 %v105_v28  ;;  %v621_v36 = vand.u32 4294901760, %v620_v34 }
   0xf   :  { %229 = vmatpush1.msra.mxu0 %v149_v17  ;;  %262 = vmatprep.mubr.f32.mxu0 %v1024_v5 }
  0x10   :  { %147 = vmatprep.subr.mxu1 %v146_v32  ;;  %380 = vmatprep.subr.mxu0 %v144_v25 }
  0x11   :  { %153 = vmatpush1.msra.mxu1 %v152_v30 }
  0x12   :  { %188 = vmatmul.mubr.f32.vlgmr.msra.gmra.mxu1 %v1064_v10  ;;  %302 = vmatprep.subr.mxu1 %v64_v15 }
  0x13   :  { %265 = vmatmul.mubr.f32.vlgmr.msra.gmra.mxu0 %v102_v16  ;;  %304 = vmatpush1.msra.mxu1 %v66_v9 }
  0x14   :  { %337 = vmatprep.mubr.f32.mxu1 %v1024_v5  ;;  %384 = vmatpush1.msra.mxu0 %v150_v22 }
  0x15   :  { %417 = vmatprep.mubr.f32.mxu0 %v1024_v5  ;;  %456 = vmatprep.subr.mxu1 %v64_v15 }
  0x16   :  { %341 = vmatmul.mubr.f32.vlgmr.msra.gmra.mxu1 %v103_v20  ;;  %540 = vmatprep.subr.mxu0 %v539_v18 }
  0x17   :  { %419 = vmatmul.mubr.f32.vlgmr.msra.gmra.mxu0 %v1064_v10  ;;  %458 = vmatpush1.msra.mxu1 %v66_v9 }
  0x18   :  { %491 = vmatprep.mubr.f32.mxu1 %v1024_v5  ;;  %542 = vmatpush1.msra.mxu0 %v541_v19 }
  0x19   :  { %575 = vmatprep.mubr.f32.mxu0 %v1024_v5  ;;  %622 = vmatprep.subr.mxu1 %v621_v36 }
  0x1a   :  { %493 = vmatmul.mubr.f32.vlgmr.msra.gmra.mxu1 %v1064_v10  ;;  %701 = vmatprep.subr.mxu0 %v618_v23 }
  0x1b   :  { %581 = vmatmul.mubr.f32.vlgmr.msra.gmra.mxu0 %v105_v28  ;;  %628 = vmatpush1.msra.mxu1 %v627_v37 }
  0x1c   :  { %661 = vmatprep.mubr.f32.mxu1 %v1024_v5  ;;  %704 = vmatpush1.msra.mxu0 %v624_v27 }
  0x1d   :  { %737 = vmatprep.mubr.f32.mxu0 %v1024_v5  ;;  %777 = vmatprep.subr.mxu1 %v539_v18 }
  0x1e   :  { %663 = vmatmul.mubr.f32.vlgmr.msra.gmra.mxu1 %v1064_v10  ;;  %855 = vmatprep.subr.mxu0 %v619_v31 }
  0x1f   :  { %740 = vmatmul.mubr.f32.vlgmr.msra.gmra.mxu0 %v102_v16  ;;  %779 = vmatpush1.msra.mxu1 %v541_v19 }
  0x20   :  { %812 = vmatprep.mubr.f32.mxu1 %v1024_v5  ;;  %859 = vmatpush1.msra.mxu0 %v625_v33 }
  0x21   :  { %892 = vmatprep.mubr.f32.mxu0 %v1024_v5  ;;  %931 = vmatprep.subr.mxu1 %v539_v18 }
  0x22   :  { %816 = vmatmul.mubr.f32.vlgmr.msra.gmra.mxu1 %v103_v20 }
  0x23   :  { %894 = vmatmul.mubr.f32.vlgmr.msra.gmra.mxu0 %v1064_v10  ;;  %933 = vmatpush1.msra.mxu1 %v541_v19 }
  0x24   :  { %966 = vmatprep.mubr.f32.mxu1 %v1024_v5 }
  0x26   :  { %968 = vmatmul.mubr.f32.vlgmr.msra.gmra.mxu1 %v1064_v10 }
  0x82   :  { %v21_v38 = vpop.permute.xlu0 %20 }
  0xce   :  { %v107_v39 = vpop.f32.mrf.mxu0 }
  0xcf   :  { %v108_v40 = vadd.f32 %v107_v39, %v21_v38 }
  0xd0   :  { %v109_v41 = vpop.f32.mrf.mxu0 }
  0xd1   :  { %v110_v43 = vadd.f32 %v109_v41, %v21_v38 }
  0xd2   :  { %v189_v42 = vpop.f32.mrf.mxu1 }
  0xd3   :  { %v190_v44 = vadd.f32 %v189_v42, %v108_v40  ;;  %v266_v45 = vpop.f32.mrf.mxu0 }
  0xd4   :  { %v191_v46 = vpop.f32.mrf.mxu1 }
  0xd5   :  { %v267_v47 = vadd.f32 %v266_v45, %v190_v44  ;;  %v192_v48 = vadd.f32 %v191_v46, %v110_v43  ;;  %v268_v49 = vpop.f32.mrf.mxu0 }
  0xd6   :  { %v342_v50 = vpop.f32.mrf.mxu1 }
  0xd7   :  { %v269_v51 = vadd.f32 %v268_v49, %v192_v48  ;;  %v343_v52 = vadd.f32 %v342_v50, %v267_v47  ;;  %v420_v53 = vpop.f32.mrf.mxu0 }
  0xd8   :  { %v344_v54 = vpop.f32.mrf.mxu1 }
  0xd9   :  { %v421_v55 = vadd.f32 %v420_v53, %v343_v52  ;;  %v345_v56 = vadd.f32 %v344_v54, %v269_v51  ;;  %v422_v57 = vpop.f32.mrf.mxu0 }
  0xda   :  { %v494_v58 = vpop.f32.mrf.mxu1 }
  0xdb   :  { %v423_v59 = vadd.f32 %v422_v57, %v345_v56  ;;  %v495_v60 = vadd.f32 %v494_v58, %v421_v55  ;;  %v582_v61 = vpop.f32.mrf.mxu0 }
  0xdc   :  { %v583_v62 = vadd.f32 %v582_v61, %v21_v38  ;;  %v496_v63 = vpop.f32.mrf.mxu1 }
  0xdd   :  { %499 = vst [vmem:[#allocation2] sm:$0xff] %v495_v60  ;;  %v497_v0 = vadd.f32 %v496_v63, %v423_v59  ;;  %v584_v1 = vpop.f32.mrf.mxu0 }
  0xde   :  { %v664_v2 = vpop.f32.mrf.mxu1  ;;  %v585_v3 = vadd.f32 %v584_v1, %v21_v38 }
  0xdf   :  { %500 = vst [vmem:[#allocation2 + $0x8] sm:$0xff] %v497_v0  ;;  %v665_v4 = vadd.f32 %v664_v2, %v583_v62  ;;  %v741_v5 = vpop.f32.mrf.mxu0 }
  0xe0   :  { %v666_v6 = vpop.f32.mrf.mxu1 }
  0xe1   :  { %v742_v7 = vadd.f32 %v741_v5, %v665_v4  ;;  %v667_v8 = vadd.f32 %v666_v6, %v585_v3  ;;  %v743_v9 = vpop.f32.mrf.mxu0 }
  0xe2   :  { %v817_v10 = vpop.f32.mrf.mxu1 }
  0xe3   :  { %v744_v11 = vadd.f32 %v743_v9, %v667_v8  ;;  %v818_v12 = vadd.f32 %v817_v10, %v742_v7  ;;  %v895_v13 = vpop.f32.mrf.mxu0 }
  0xe4   :  { %v819_v14 = vpop.f32.mrf.mxu1 }
  0xe5   :  { %v896_v15 = vadd.f32 %v895_v13, %v818_v12  ;;  %v820_v16 = vadd.f32 %v819_v14, %v744_v11  ;;  %v897_v17 = vpop.f32.mrf.mxu0 }
  0xe6   :  { %v969_v18 = vpop.f32.mrf.mxu1 }
  0xe7   :  { %v898_v19 = vadd.f32 %v897_v17, %v820_v16  ;;  %v970_v20 = vadd.f32 %v969_v18, %v896_v15 }
  0xe8   :  { %v971_v21 = vpop.f32.mrf.mxu1 }
  0xe9   :  { %975 = vst [vmem:[#allocation2 + $0x10] sm:$0xff] %v970_v20  ;;  %v972_v22 = vadd.f32 %v971_v21, %v898_v19 }
  0xeb   :  { %976 = vst [vmem:[#allocation2 + $0x18] sm:$0xff] %v972_v22 }
  0xec   :  { %1013 = shalt.err (!%p1010_p4)
}
  0xed   :  { %s1027_s20 = smov 256   ;;  %s1028_s21 = smov 16  }
  0xee   :  { %988 = dma.vmem_to_hbm [thread:$0]  %s983_s1, 512, %s1092_s3, [#allocation3], %s1027_s20, %s1027_s20, %s1028_s21  }
  0xef   :  { %1022 = dma.done.wait [#allocation3], 512  }
  0xf0   :  { %1023 = vsyncadd [#allocation3], 4294966784 }
  0xf1   :  { %992 = vsyncpa [#allocation3], 1 }

</bundles_post_ra>
